<compile_context>
chip_gen: v5e
topology: v5e:2x2
jax: 0.10.0
libtpu: 0.0.40
codegen_flags: <defaults>
</compile_context>

<pallas_src>
import functools

import jax
import jax.numpy as jnp
from jax.experimental import pallas as pl
from jax.experimental.pallas import tpu as pltpu


def _cdiv(a, b):
    return -(-a // b)


def _round_up(x, m):
    return _cdiv(x, m) * m


def _device_vmem_bytes():
    try:
        info = pltpu.get_tpu_info()
        return int(getattr(info, "vmem_capacity_bytes", 0) or 0)
    except Exception:
        return 0


def _point_projection_kernel(x_ref, w_ref, b_ref, rot_ref, trans_ref, out_ref,
                             *, out_cols):
    w = w_ref[...]
    x = x_ref[...].astype(w.dtype)          # in-kernel cast: no extra HBM pass
    # (br, out_w) f32; columns are (h, p, c)-interleaved, j = 3*(h*P+p)+c,
    # zero-padded beyond out_cols = 3*H*P.
    local = jnp.dot(x, w, preferred_element_type=jnp.float32) + b_ref[...]

    out_w = local.shape[-1]
    # Neighbour streams within each (x, y, z) triple.  pltpu.roll(v, s)[j] ==
    # v[(j - s) mod out_w] (jnp.roll semantics); only in-triple neighbours are
    # ever selected below, so the cyclic wrap at the slab edges is never read.
    lp1 = pltpu.roll(local, 1, 1)            # local[:, j-1]
    lp2 = pltpu.roll(local, 2, 1)            # local[:, j-2]
    lm1 = pltpu.roll(local, out_w - 1, 1)    # local[:, j+1]
    lm2 = pltpu.roll(local, out_w - 2, 1)    # local[:, j+2]

    c = jax.lax.broadcasted_iota(jnp.int32, (1, out_w), 1) % 3
    is0 = c == 0
    is1 = c == 1

    # Local x/y/z coordinate of the point owning lane j (interleaved layout).
    px = jnp.where(is0, local, jnp.where(is1, lp1, lp2))
    py = jnp.where(is0, lm1, jnp.where(is1, local, lp1))
    pz = jnp.where(is0, lm2, jnp.where(is1, lm1, local))

    rot = rot_ref[...]       # (br, 9)  row-major 3x3
    trn = trans_ref[...]     # (br, 3)
    # Rotation-matrix row / translation component that lane j needs (c = j%3).
    r0 = jnp.where(is0, rot[:, 0:1], jnp.where(is1, rot[:, 3:4], rot[:, 6:7]))
    r1 = jnp.where(is0, rot[:, 1:2], jnp.where(is1, rot[:, 4:5], rot[:, 7:8]))
    r2 = jnp.where(is0, rot[:, 2:3], jnp.where(is1, rot[:, 5:6], rot[:, 8:9]))
    t = jnp.where(is0, trn[:, 0:1], jnp.where(is1, trn[:, 1:2], trn[:, 2:3]))

    glob = r0 * px + r1 * py + r2 * pz + t          # rigids.apply(points_local)
    out_ref[...] = glob[:, :out_cols].astype(out_ref.dtype)


def prepare_point_projection_params(weight, bias, *, no_heads, num_points,
                                    is_multimer, compute_dtype=jnp.bfloat16):
    """weight: (c_hidden, no_heads*3*num_points), convention y = x @ weight + bias.
    Returns (w_prepared, b_prepared); cache these across forward calls."""
    H, P = no_heads, num_points
    out_cols = 3 * H * P
    out_w = _round_up(out_cols, 128)
    h = jnp.arange(H)[:, None, None]
    p = jnp.arange(P)[None, :, None]
    c = jnp.arange(3)[None, None, :]
    if is_multimer:
        perm = h * 3 * P + c * P + p      # torch Linear column for (h, p, c)
    else:
        perm = c * H * P + h * P + p
    perm = perm.reshape(-1)               # new column j = 3*(h*P+p) + c
    w_p = jnp.pad(weight[:, perm], ((0, 0), (0, out_w - out_cols)))
    b_p = jnp.pad(bias[perm], (0, out_w - out_cols)).reshape(1, out_w)
    # TODO(synk): torch multimer path configures the Linear in f32 precision;
    # pass compute_dtype=jnp.float32 to match it exactly (default bf16 stream
    # with f32 MXU accumulation per perf guidance).
    return w_p.astype(compute_dtype), b_p.astype(jnp.float32)


def point_projection(activations, rot, trans, w_prepared, b_prepared, *,
                     no_heads, num_points, block_rows=None,
                     out_dtype=jnp.float32):
    """activations: (*batch, C); rot: (*batch, 3, 3); trans: (*batch, 3).
    Returns points_global: (*batch, no_heads, num_points, 3)."""
    # TODO(synk): return_local_points=True path not implemented (default False).
    batch_shape = activations.shape[:-1]
    C = activations.shape[-1]
    H, P = no_heads, num_points
    out_cols = 3 * H * P
    out_w = w_prepared.shape[-1]

    N = 1
    for d in batch_shape:
        N *= d

    vmem_cap_dev = _device_vmem_bytes()
    big_vmem = vmem_cap_dev >= (100 << 20)      # v5e/v6e 128 MiB vs v7x 64 MiB
    if block_rows is None:
        block_rows = 1024 if big_vmem else 512

    # Row tile: multiple of 16 sublanes (bf16 packing); aim for >= ~4 tiles for
    # large N so v7x shards the "parallel" axis across both TensorCores and the
    # pipeline has steps to overlap; tiny N falls back to one full-size tile.
    if N <= 16:
        br = N
    else:
        br = min(block_rows, max(16, _round_up(_cdiv(N, 4), 16)))
        br = min(br, _round_up(N, 16))
    grid = (_cdiv(N, br),)

    x2d = activations.reshape(N, C)                    # no pad, no cast pass
    rot2d = rot.reshape(N, 9).astype(jnp.float32)      # free row-major reshape
    trans2d = trans.reshape(N, 3).astype(jnp.float32)

    # VMEM budget: double-buffered streaming tiles + resident weight/bias +
    # in-kernel f32 intermediates (local + 4 rolled copies + selects/coeffs).
    x_bytes = jnp.dtype(x2d.dtype).itemsize
    w_bytes = jnp.dtype(w_prepared.dtype).itemsize
    vmem_bytes = (
        2 * br * _round_up(C, 128) * x_bytes           # activations tile x2
        + 2 * br * 128 * 4                             # rot tile x2 (lane-padded)
        + 2 * br * 128 * 4                             # trans tile x2
        + 2 * br * out_w * 4                           # output tile x2 (lane-padded)
        + 2 * _round_up(C, 16) * out_w * w_bytes       # weight (grid-invariant)
        + 2 * 8 * out_w * 4                            # bias
        + 10 * br * out_w * 4                          # f32 intermediates
    )
    vmem_cap = (96 << 20) if big_vmem else (40 << 20)
    vmem_limit = min(max(int(1.3 * vmem_bytes) + (4 << 20), 16 << 20), vmem_cap)

    out = pl.pallas_call(
        functools.partial(_point_projection_kernel, out_cols=out_cols),
        out_shape=jax.ShapeDtypeStruct((N, out_cols), out_dtype),
        grid_spec=pltpu.PrefetchScalarGridSpec(
            num_scalar_prefetch=0,
            grid=grid,
            in_specs=[
                pl.BlockSpec((br, C), lambda i: (i, 0)),
                # Grid-invariant weight/bias (constant index_map -> stays resident).
                pl.BlockSpec((C, out_w), lambda i: (0, 0)),
                pl.BlockSpec((1, out_w), lambda i: (0, 0)),
                pl.BlockSpec((br, 9), lambda i: (i, 0)),
                pl.BlockSpec((br, 3), lambda i: (i, 0)),
            ],
            out_specs=pl.BlockSpec((br, out_cols), lambda i: (i, 0)),
        ),
        compiler_params=pltpu.CompilerParams(
            dimension_semantics=("parallel",),
            vmem_limit_bytes=vmem_limit),
    )(x2d, w_prepared, b_prepared, rot2d, trans2d)

    # Columns are already (h, p, c)-interleaved: pure reshape, no HBM transpose.
    return out.reshape(batch_shape + (H, P, 3))


def _quat_to_rotmat(q):
    q = q / jnp.linalg.norm(q, axis=-1, keepdims=True)
    w, x, y, z = q[..., 0], q[..., 1], q[..., 2], q[..., 3]
    rows = jnp.stack([
        1 - 2 * (y * y + z * z), 2 * (x * y - w * z), 2 * (x * z + w * y),
        2 * (x * y + w * z), 1 - 2 * (x * x + z * z), 2 * (y * z - w * x),
        2 * (x * z - w * y), 2 * (y * z + w * x), 1 - 2 * (x * x + y * y),
    ], axis=-1)
    return rows.reshape(q.shape[:-1] + (3, 3))


def _reference(x, weight, bias, rotmat, trans, no_heads, num_points, is_multimer):
    """Plain-JAX replica of the torch forward (for verification)."""
    H, P = no_heads, num_points
    batch = x.shape[:-1]
    lin = x @ weight + bias                                  # (*batch, H*3*P)
    if is_multimer:
        local = lin.reshape(batch + (H, 3, P))
        local = jnp.moveaxis(local, -2, -1)                  # (*batch, H, P, 3)
    else:
        local = lin.reshape(batch + (3, H, P))
        local = jnp.moveaxis(local, -3, -1)                  # (*batch, H, P, 3)
    glob = jnp.einsum('...ij,...hpj->...hpi', rotmat, local) + trans[..., None, None, :]
    return glob


if __name__ == "__main__":
    def _run_case(key, batch_shape, C, H, P):
        k_x, k_w, k_b, k_q, k_t = jax.random.split(key, 5)
        activations = jax.random.normal(k_x, batch_shape + (C,), dtype=jnp.float32)
        weight = jax.random.normal(k_w, (C, H * 3 * P), dtype=jnp.float32) * 0.1
        bias = jax.random.normal(k_b, (H * 3 * P,), dtype=jnp.float32) * 0.01
        quats = jax.random.normal(k_q, batch_shape + (4,), dtype=jnp.float32)
        rotmat = _quat_to_rotmat(quats)                      # (*batch, 3, 3)
        trans = jax.random.normal(k_t, batch_shape + (3,), dtype=jnp.float32)

        # Reference uses the same bf16-rounded matmul operands the kernel uses
        # (accumulation stays f32), isolating kernel semantics.
        x_bf = activations.astype(jnp.bfloat16).astype(jnp.float32)
        w_bf = weight.astype(jnp.bfloat16).astype(jnp.float32)

        for is_multimer in (False, True):
            w_p, b_p = prepare_point_projection_params(
                weight, bias, no_heads=H, num_points=P, is_multimer=is_multimer)
            out = point_projection(activations, rotmat, trans, w_p, b_p,
                                   no_heads=H, num_points=P)
            out = jax.block_until_ready(out)
            ref = _reference(x_bf, w_bf, bias, rotmat, trans, H, P, is_multimer)
            assert out.shape == batch_shape + (H, P, 3)
            assert jnp.allclose(out, ref, atol=1e-3, rtol=1e-3), (
                f"mismatch vs reference (multimer={is_multimer}, batch={batch_shape})")

    key = jax.random.PRNGKey(0)
    k1, k2 = jax.random.split(key)
    # batch=2, seq=8, c_hidden=32, heads=4, points=4  (single-tile path)
    _run_case(k1, (2, 8), 32, 4, 4)
    # ragged multi-tile path: N = 3*37 = 111 rows -> 4 row tiles, last partial
    _run_case(k2, (3, 37), 32, 4, 4)
    print("KERNEL_OK")
</pallas_src>

<mosaic_0001>
module attributes {stable_mosaic.version = 11 : i64} {
  func.func @_point_projection_kernel(%arg0: i32, %arg1: memref<16x32xf32, #tpu.memory_space<vmem>>, %arg2: memref<32x128xbf16, #tpu.memory_space<vmem>>, %arg3: memref<1x128xf32, #tpu.memory_space<vmem>>, %arg4: memref<16x9xf32, #tpu.memory_space<vmem>>, %arg5: memref<16x3xf32, #tpu.memory_space<vmem>>, %arg6: memref<16x48xf32, #tpu.memory_space<vmem>>) attributes {dimension_semantics = [#tpu.dimension_semantics<parallel>], iteration_bounds = array<i64: 1>, scalar_prefetch = 0 : i64, scratch_operands = 0 : i64, tpu.core_type = #tpu.core_type<tc>, window_params = [{transform_indices = @transform_0, window_bounds = array<i64: 16, 32>}, {pipeline_mode = #tpu.pipeline_mode<synchronous>, transform_indices = @transform_1, window_bounds = array<i64: 32, 128>}, {pipeline_mode = #tpu.pipeline_mode<synchronous>, transform_indices = @transform_2, window_bounds = array<i64: 1, 128>}, {transform_indices = @transform_3, window_bounds = array<i64: 16, 9>}, {transform_indices = @transform_4, window_bounds = array<i64: 16, 3>}, {transform_indices = @transform_5, window_bounds = array<i64: 16, 48>}]} {
    %c0 = arith.constant 0 : index
    %c0_0 = arith.constant 0 : index
    %0 = vector.load %arg2[%c0, %c0_0] : memref<32x128xbf16, #tpu.memory_space<vmem>>, vector<32x128xbf16>
    %c0_1 = arith.constant 0 : index
    %c0_2 = arith.constant 0 : index
    %1 = vector.load %arg1[%c0_1, %c0_2] : memref<16x32xf32, #tpu.memory_space<vmem>>, vector<16x32xf32>
    %2 = arith.truncf %1 : vector<16x32xf32> to vector<16x32xbf16>
    %cst = arith.constant dense<0.000000e+00> : vector<16x128xf32>
    %3 = tpu.matmul %2, %0, %cst {dimension_numbers = #tpu.dot_dimension_numbers<[1], [0], [0], [1], [0, 0, 1, 1], [], []>} : vector<16x32xbf16>, vector<32x128xbf16>, vector<16x128xf32> -> vector<16x128xf32>
    %c0_3 = arith.constant 0 : index
    %c0_4 = arith.constant 0 : index
    %4 = vector.load %arg3[%c0_3, %c0_4] : memref<1x128xf32, #tpu.memory_space<vmem>>, vector<1x128xf32>
    %5 = vector.broadcast %4 : vector<1x128xf32> to vector<16x128xf32>
    %6 = arith.addf %3, %5 : vector<16x128xf32>
    %c1_i32 = arith.constant 1 : i32
    %7 = tpu.dynamic_rotate %6 by %c1_i32 dim 1 : vector<16x128xf32>, i32 -> vector<16x128xf32>
    %c2_i32 = arith.constant 2 : i32
    %8 = tpu.dynamic_rotate %6 by %c2_i32 dim 1 : vector<16x128xf32>, i32 -> vector<16x128xf32>
    %c127_i32 = arith.constant 127 : i32
    %9 = tpu.dynamic_rotate %6 by %c127_i32 dim 1 : vector<16x128xf32>, i32 -> vector<16x128xf32>
    %c126_i32 = arith.constant 126 : i32
    %10 = tpu.dynamic_rotate %6 by %c126_i32 dim 1 : vector<16x128xf32>, i32 -> vector<16x128xf32>
    %11 = tpu.iota {dimensions = array<i32: 1>} : vector<1x128xi32>
    %c3_i32 = arith.constant 3 : i32
    %c0_i32 = arith.constant 0 : i32
    %12 = arith.cmpi eq, %c3_i32, %c0_i32 : i32
    %c1_i32_5 = arith.constant 1 : i32
    %13 = arith.select %12, %c1_i32_5, %c3_i32 : i32
    %14 = vector.broadcast %13 : i32 to vector<1x128xi32>
    %15 = arith.remsi %11, %14 : vector<1x128xi32>
    %c0_i32_6 = arith.constant 0 : i32
    %16 = vector.broadcast %c0_i32_6 : i32 to vector<1x128xi32>
    %17 = arith.cmpi ne, %15, %16 : vector<1x128xi32>
    %c0_i32_7 = arith.constant 0 : i32
    %18 = vector.broadcast %c0_i32_7 : i32 to vector<1x128xi32>
    %19 = arith.cmpi slt, %15, %18 : vector<1x128xi32>
    %c0_i32_8 = arith.constant 0 : i32
    %20 = arith.cmpi slt, %13, %c0_i32_8 : i32
    %21 = vector.broadcast %20 : i1 to vector<1x128xi1>
    %22 = vector.broadcast %21 : vector<1x128xi1> to vector<1x128xi1>
    %23 = arith.xori %19, %22 : vector<1x128xi1>
    %24 = arith.andi %23, %17 : vector<1x128xi1>
    %25 = vector.broadcast %13 : i32 to vector<1x128xi32>
    %26 = arith.addi %15, %25 : vector<1x128xi32>
    %27 = arith.select %24, %26, %15 : vector<1x128xi1>, vector<1x128xi32>
    %c0_i32_9 = arith.constant 0 : i32
    %28 = vector.broadcast %c0_i32_9 : i32 to vector<1x128xi32>
    %29 = arith.cmpi eq, %27, %28 : vector<1x128xi32>
    %c1_i32_10 = arith.constant 1 : i32
    %30 = vector.broadcast %c1_i32_10 : i32 to vector<1x128xi32>
    %31 = arith.cmpi eq, %27, %30 : vector<1x128xi32>
    %32 = vector.shape_cast %31 : vector<1x128xi1> to vector<1x128xi1>
    %33 = vector.broadcast %32 : vector<1x128xi1> to vector<16x128xi1>
    %34 = arith.select %33, %7, %8 : vector<16x128xi1>, vector<16x128xf32>
    %35 = vector.shape_cast %29 : vector<1x128xi1> to vector<1x128xi1>
    %36 = vector.broadcast %35 : vector<1x128xi1> to vector<16x128xi1>
    %37 = arith.select %36, %6, %34 : vector<16x128xi1>, vector<16x128xf32>
    %38 = vector.shape_cast %31 : vector<1x128xi1> to vector<1x128xi1>
    %39 = vector.broadcast %38 : vector<1x128xi1> to vector<16x128xi1>
    %40 = arith.select %39, %6, %7 : vector<16x128xi1>, vector<16x128xf32>
    %41 = vector.shape_cast %29 : vector<1x128xi1> to vector<1x128xi1>
    %42 = vector.broadcast %41 : vector<1x128xi1> to vector<16x128xi1>
    %43 = arith.select %42, %9, %40 : vector<16x128xi1>, vector<16x128xf32>
    %44 = vector.shape_cast %31 : vector<1x128xi1> to vector<1x128xi1>
    %45 = vector.broadcast %44 : vector<1x128xi1> to vector<16x128xi1>
    %46 = arith.select %45, %9, %6 : vector<16x128xi1>, vector<16x128xf32>
    %47 = vector.shape_cast %29 : vector<1x128xi1> to vector<1x128xi1>
    %48 = vector.broadcast %47 : vector<1x128xi1> to vector<16x128xi1>
    %49 = arith.select %48, %10, %46 : vector<16x128xi1>, vector<16x128xf32>
    %c0_11 = arith.constant 0 : index
    %c0_12 = arith.constant 0 : index
    %50 = vector.load %arg4[%c0_11, %c0_12] : memref<16x9xf32, #tpu.memory_space<vmem>>, vector<16x9xf32>
    %c0_13 = arith.constant 0 : index
    %c0_14 = arith.constant 0 : index
    %51 = vector.load %arg5[%c0_13, %c0_14] : memref<16x3xf32, #tpu.memory_space<vmem>>, vector<16x3xf32>
    %52 = vector.extract_strided_slice %50 {offsets = [0, 0], sizes = [16, 1], strides = [1, 1]} : vector<16x9xf32> to vector<16x1xf32>
    %53 = vector.extract_strided_slice %50 {offsets = [0, 3], sizes = [16, 1], strides = [1, 1]} : vector<16x9xf32> to vector<16x1xf32>
    %54 = vector.extract_strided_slice %50 {offsets = [0, 6], sizes = [16, 1], strides = [1, 1]} : vector<16x9xf32> to vector<16x1xf32>
    %55 = vector.shape_cast %31 : vector<1x128xi1> to vector<1x128xi1>
    %56 = vector.broadcast %55 : vector<1x128xi1> to vector<16x128xi1>
    %57 = vector.shape_cast %53 : vector<16x1xf32> to vector<16x1xf32>
    %58 = vector.broadcast %57 : vector<16x1xf32> to vector<16x128xf32>
    %59 = vector.shape_cast %54 : vector<16x1xf32> to vector<16x1xf32>
    %60 = vector.broadcast %59 : vector<16x1xf32> to vector<16x128xf32>
    %61 = arith.select %56, %58, %60 : vector<16x128xi1>, vector<16x128xf32>
    %62 = vector.shape_cast %29 : vector<1x128xi1> to vector<1x128xi1>
    %63 = vector.broadcast %62 : vector<1x128xi1> to vector<16x128xi1>
    %64 = vector.shape_cast %52 : vector<16x1xf32> to vector<16x1xf32>
    %65 = vector.broadcast %64 : vector<16x1xf32> to vector<16x128xf32>
    %66 = arith.select %63, %65, %61 : vector<16x128xi1>, vector<16x128xf32>
    %67 = vector.extract_strided_slice %50 {offsets = [0, 1], sizes = [16, 1], strides = [1, 1]} : vector<16x9xf32> to vector<16x1xf32>
    %68 = vector.extract_strided_slice %50 {offsets = [0, 4], sizes = [16, 1], strides = [1, 1]} : vector<16x9xf32> to vector<16x1xf32>
    %69 = vector.extract_strided_slice %50 {offsets = [0, 7], sizes = [16, 1], strides = [1, 1]} : vector<16x9xf32> to vector<16x1xf32>
    %70 = vector.shape_cast %31 : vector<1x128xi1> to vector<1x128xi1>
    %71 = vector.broadcast %70 : vector<1x128xi1> to vector<16x128xi1>
    %72 = vector.shape_cast %68 : vector<16x1xf32> to vector<16x1xf32>
    %73 = vector.broadcast %72 : vector<16x1xf32> to vector<16x128xf32>
    %74 = vector.shape_cast %69 : vector<16x1xf32> to vector<16x1xf32>
    %75 = vector.broadcast %74 : vector<16x1xf32> to vector<16x128xf32>
    %76 = arith.select %71, %73, %75 : vector<16x128xi1>, vector<16x128xf32>
    %77 = vector.shape_cast %29 : vector<1x128xi1> to vector<1x128xi1>
    %78 = vector.broadcast %77 : vector<1x128xi1> to vector<16x128xi1>
    %79 = vector.shape_cast %67 : vector<16x1xf32> to vector<16x1xf32>
    %80 = vector.broadcast %79 : vector<16x1xf32> to vector<16x128xf32>
    %81 = arith.select %78, %80, %76 : vector<16x128xi1>, vector<16x128xf32>
    %82 = vector.extract_strided_slice %50 {offsets = [0, 2], sizes = [16, 1], strides = [1, 1]} : vector<16x9xf32> to vector<16x1xf32>
    %83 = vector.extract_strided_slice %50 {offsets = [0, 5], sizes = [16, 1], strides = [1, 1]} : vector<16x9xf32> to vector<16x1xf32>
    %84 = vector.extract_strided_slice %50 {offsets = [0, 8], sizes = [16, 1], strides = [1, 1]} : vector<16x9xf32> to vector<16x1xf32>
    %85 = vector.shape_cast %31 : vector<1x128xi1> to vector<1x128xi1>
    %86 = vector.broadcast %85 : vector<1x128xi1> to vector<16x128xi1>
    %87 = vector.shape_cast %83 : vector<16x1xf32> to vector<16x1xf32>
    %88 = vector.broadcast %87 : vector<16x1xf32> to vector<16x128xf32>
    %89 = vector.shape_cast %84 : vector<16x1xf32> to vector<16x1xf32>
    %90 = vector.broadcast %89 : vector<16x1xf32> to vector<16x128xf32>
    %91 = arith.select %86, %88, %90 : vector<16x128xi1>, vector<16x128xf32>
    %92 = vector.shape_cast %29 : vector<1x128xi1> to vector<1x128xi1>
    %93 = vector.broadcast %92 : vector<1x128xi1> to vector<16x128xi1>
    %94 = vector.shape_cast %82 : vector<16x1xf32> to vector<16x1xf32>
    %95 = vector.broadcast %94 : vector<16x1xf32> to vector<16x128xf32>
    %96 = arith.select %93, %95, %91 : vector<16x128xi1>, vector<16x128xf32>
    %97 = vector.extract_strided_slice %51 {offsets = [0, 0], sizes = [16, 1], strides = [1, 1]} : vector<16x3xf32> to vector<16x1xf32>
    %98 = vector.extract_strided_slice %51 {offsets = [0, 1], sizes = [16, 1], strides = [1, 1]} : vector<16x3xf32> to vector<16x1xf32>
    %99 = vector.extract_strided_slice %51 {offsets = [0, 2], sizes = [16, 1], strides = [1, 1]} : vector<16x3xf32> to vector<16x1xf32>
    %100 = vector.shape_cast %31 : vector<1x128xi1> to vector<1x128xi1>
    %101 = vector.broadcast %100 : vector<1x128xi1> to vector<16x128xi1>
    %102 = vector.shape_cast %98 : vector<16x1xf32> to vector<16x1xf32>
    %103 = vector.broadcast %102 : vector<16x1xf32> to vector<16x128xf32>
    %104 = vector.shape_cast %99 : vector<16x1xf32> to vector<16x1xf32>
    %105 = vector.broadcast %104 : vector<16x1xf32> to vector<16x128xf32>
    %106 = arith.select %101, %103, %105 : vector<16x128xi1>, vector<16x128xf32>
    %107 = vector.shape_cast %29 : vector<1x128xi1> to vector<1x128xi1>
    %108 = vector.broadcast %107 : vector<1x128xi1> to vector<16x128xi1>
    %109 = vector.shape_cast %97 : vector<16x1xf32> to vector<16x1xf32>
    %110 = vector.broadcast %109 : vector<16x1xf32> to vector<16x128xf32>
    %111 = arith.select %108, %110, %106 : vector<16x128xi1>, vector<16x128xf32>
    %112 = arith.mulf %66, %37 : vector<16x128xf32>
    %113 = arith.mulf %81, %43 : vector<16x128xf32>
    %114 = arith.addf %112, %113 : vector<16x128xf32>
    %115 = arith.mulf %96, %49 : vector<16x128xf32>
    %116 = arith.addf %114, %115 : vector<16x128xf32>
    %117 = arith.addf %116, %111 : vector<16x128xf32>
    %118 = vector.extract_strided_slice %117 {offsets = [0, 0], sizes = [16, 48], strides = [1, 1]} : vector<16x128xf32> to vector<16x48xf32>
    %c0_15 = arith.constant 0 : index
    %c0_16 = arith.constant 0 : index
    %119 = vector.load %arg6[%c0_15, %c0_16] : memref<16x48xf32, #tpu.memory_space<vmem>>, vector<16x48xf32>
    tpu.vector_store %arg6[%c0_15, %c0_16], %118 {strides = array<i32>} : memref<16x48xf32, #tpu.memory_space<vmem>>, vector<16x48xf32>,
    return
  }
  func.func @transform_0(%arg0: i32) -> (i32, i32) {
    %c0_i32 = arith.constant 0 : i32
    %c0_i32_0 = arith.constant 0 : i32
    return %arg0, %c0_i32 : i32, i32
  }
  func.func @transform_1(%arg0: i32) -> (i32, i32) {
    %c0_i32 = arith.constant 0 : i32
    %c0_i32_0 = arith.constant 0 : i32
    %c0_i32_1 = arith.constant 0 : i32
    return %c0_i32, %c0_i32_0 : i32, i32
  }
  func.func @transform_2(%arg0: i32) -> (i32, i32) {
    %c0_i32 = arith.constant 0 : i32
    %c0_i32_0 = arith.constant 0 : i32
    %c0_i32_1 = arith.constant 0 : i32
    return %c0_i32, %c0_i32_0 : i32, i32
  }
  func.func @transform_3(%arg0: i32) -> (i32, i32) {
    %c0_i32 = arith.constant 0 : i32
    %c0_i32_0 = arith.constant 0 : i32
    return %arg0, %c0_i32 : i32, i32
  }
  func.func @transform_4(%arg0: i32) -> (i32, i32) {
    %c0_i32 = arith.constant 0 : i32
    %c0_i32_0 = arith.constant 0 : i32
    return %arg0, %c0_i32 : i32, i32
  }
  func.func @transform_5(%arg0: i32) -> (i32, i32) {
    %c0_i32 = arith.constant 0 : i32
    %c0_i32_0 = arith.constant 0 : i32
    return %arg0, %c0_i32 : i32, i32
  }
}

</mosaic_0001>

<bundles_post_ra>
// kernel: tpu_custom_call.1
= control target key start
LH: loop header
LB: loop body
LE: loop exit
PB: predicated region body
PF: predicated region fallthrough
CT: control target
= control target key end

     0   :  { %10 = vsyncpa [#allocation3], 0  ;;  %s611_s0 = inlined_call_operand.vmem [shape: f32[16,32], index: 0, kind: input, shape index: {}]   ;;  %s612_s1 = inlined_call_operand.hbm [shape: bf16[32,128], index: 1, kind: input, shape index: {}]   ;;  %s613_s2 = inlined_call_operand.vmem [shape: f32[1,128], index: 2, kind: input, shape index: {}]   ;;  %s614_s3 = inlined_call_operand.hbm [shape: f32[16,9], index: 3, kind: input, shape index: {}]   ;;  %s615_s4 = inlined_call_operand.vmem [shape: f32[16,3], index: 4, kind: input, shape index: {}]   ;;  %s616_s5 = inlined_call_operand.hbm [shape: f32[16,48], index: 5, kind: output, shape index: {}]  }
   0x1   :  { %11 = vsyncpa [#allocation6], 0 }
   0x2   :  { %12 = vsyncpa [#allocation4], 0  ;;  %s19_s20 = sshll.u32 %s612_s1, 4  ;;  %s454_s21 = smov [#allocation2]   ;;  %s20_s20 = int_to_ptr.hbm [resolvable:$true] %s19_s20 }
   0x3   :  { %s21_s22 = sshll.u32 %s454_s21, 4  ;;  %s34_s25 = sshll.u32 %s614_s3, 4  ;;  %s22_s22 = int_to_ptr.vmem [resolvable:$true] %s21_s22  ;;  %s35_s25 = int_to_ptr.hbm [resolvable:$true] %s34_s25 }
   0x4   :  { %s455_s26 = smov 64   ;;  %s456_s27 = smov 4  }
   0x5   :  { %27 = dma.hbm_to_vmem [thread:$0]  %s20_s20, 256, %s22_s22, [#allocation3], %s455_s26, %s455_s26, %s456_s27  }
   0x6   :  { %s457_s28 = smov [#allocation5]   ;;  %s458_s30 = smov 128  }
   0x7   :  { %s36_s29 = sshll.u32 %s457_s28, 4  ;;  %s459_s6 = smov 8   ;;  %s37_s29 = int_to_ptr.vmem [resolvable:$true] %s36_s29 }
   0x8   :  { %42 = dma.hbm_to_vmem [thread:$0]  %s35_s25, 256, %s37_s29, [#allocation6], %s458_s30, %s458_s30, %s459_s6  }
   0x9   :  { %448 = dma.done.wait [#allocation3], 256  }
   0xa   :  { %449 = vsyncadd [#allocation3], 4294967040 }
   0xb   :  { %450 = dma.done.wait [#allocation6], 256  }
   0xc   :  { %451 = vsyncadd [#allocation6], 4294967040  ;;  %v460_v0 = vmov 3   ;;  %v461_v1 = vmov 6   ;;  %v330_v2 = vld [vmem:[#allocation2 + $0x8] sm:$0xff]  ;;  %v329_v3 = vld [vmem:[#allocation2] sm:$0xff]  ;;  %v111_v18 = vlaneseq }
   0xd   :  { %351 = vset.pattern.permute.xlu2 %v460_v0  ;;  %353 = vset.pattern.permute.xlu1 %v461_v1  ;;  %v58_v4 = vld [vmem:[%s611_s0] sm:$0xff]  ;;  %v165_v5 = vld [vmem:[#allocation5] sm:$0xff]  ;;  %v59_v6 = vld [vmem:[%s611_s0 + $0x8] sm:$0xff]  ;;  %vm77_vm0 = vcmask 261120   ;;  %v462_v9 = vmov 0   ;;  %v463_v10 = vmov 4  }
   0xe   :  { %352 = vset.pattern.permute.xlu0 %v460_v0  ;;  %87 = vmatpush.bf16.msra.mxu0 %v330_v2  ;;  %v166_v7 = vld [vmem:[#allocation5 + $0x8] sm:$0xff]  ;;  %v60_v8 = vpack.c.bf16 %v59_v6, %v58_v4  ;;  %v464_v11 = vmov 1   ;;  %v465_v12 = vmov 7   ;;  %v466_v13 = vmov 2   ;;  %v524_v16 = vld [vmem:[%s615_s4] sm:$0xff]  ;;  %v529_v17 = vld [vmem:[%s615_s4 + $0x8] sm:$0xff] }
   0xf   :  { %171 = vperm.xlu2 %351, %v165_v5   ;;  %180 = vperm.xlu1 %353, %v165_v5   ;;  %v467_v14 = vmov 5   ;;  %v468_v15 = vmov 8   ;;  %v112_v19 = vand.u32 127, %v111_v18  ;;  %v375_v44 = vld [vmem:[%s613_s2] ss:$0 sm:$0xff]  ;;  %s469_s13 = smov 127  }
  0x10   :  { %176 = vperm.xlu0 %352, %v166_v7   ;;  %s470_s14 = smov 2   ;;  %s471_s2 = smov 1   ;;  %vm297_vm8 = vcmask 392192  }
  0x11   :  { %v116_v20 = vand.u32 65535, %v112_v19  ;;  %v117_v21 = vshrl.u32 %v112_v19, 16  ;;  %s472_s15 = smov 126   ;;  %s473_s16 = smov [#allocation7]  }
  0x12   :  { %88 = vmatpush.bf16.msra.mxu0 %v329_v3  ;;  %s304_s17 = sshll.u32 %s473_s16, 4  ;;  %s306_s20 = sshll.u32 %s616_s5, 4  ;;  %s305_s17 = int_to_ptr.vmem [resolvable:$true] %s304_s17  ;;  %s307_s20 = int_to_ptr.hbm [resolvable:$true] %s306_s20 }
  0x13   :  { %v120_v22 = vmul.u32 43690, %v116_v20  ;;  %v119_v23 = vmul.u32 43691, %v116_v20  ;;  %v121_v24 = vmul.u32 43691, %v117_v21  ;;  %v122_v28 = vmul.u32 43690, %v117_v21 }
  0x15   :  { %328 = vmatmul.msk.bf16.vlgmr.msra.gmra.mxu0 %vm77_vm0, %v60_v8  ;;  %v123_v25 = vshll.u32 %v120_v22, 16  ;;  %v125_v26 = vshll.u32 %v121_v24, 16  ;;  %v124_v32 = vshrl.u32 %v120_v22, 16  ;;  %v126_v34 = vshrl.u32 %v121_v24, 16 }
  0x17   :  { %354 = vset.pattern.permute.xlu2 %v461_v1  ;;  %355 = vset.pattern.permute.xlu1 %v462_v9  ;;  %vm127_vm1 = vc.u32 %v119_v23, %v123_v25  ;;  %v129_v27 = vadd.s32 %v123_v25, %v119_v23 }
  0x18   :  { %184 = vperm.xlu2 %354, %v166_v7   ;;  %190 = vperm.xlu1 %355, %v165_v5   ;;  %v128_v29 = vsel %vm127_vm1, 1, %v462_v9 }
  0x19   :  { %357 = vset.pattern.permute.xlu0 %v463_v10  ;;  %vm131_vm2 = vc.u32 %v129_v27, %v125_v26  ;;  %v130_v30 = vadd.s32 %v128_v29, %v122_v28 }
  0x1a   :  { %200 = vperm.xlu0 %357, %v165_v5   ;;  %v132_v31 = vsel %vm131_vm2, 1, %v462_v9 }
  0x1b   :  { %v134_v33 = vadd.s32 %v132_v31, %v130_v30 }
  0x1d   :  { %v135_v35 = vadd.s32 %v134_v33, %v124_v32 }
  0x1f   :  { %v136_v36 = vadd.s32 %v135_v35, %v126_v34 }
  0x20   :  { %356 = vset.pattern.permute.xlu2 %v462_v9  ;;  %358 = vset.pattern.permute.xlu1 %v463_v10 }
  0x21   :  { %194 = vperm.xlu2 %356, %v166_v7   ;;  %204 = vperm.xlu1 %358, %v166_v7   ;;  %v137_v37 = vshrl.u32 %v136_v36, 1 }
  0x22   :  { %362 = vset.pattern.permute.xlu0 %v464_v11 }
  0x23   :  { %222 = vperm.xlu0 %362, %v166_v7   ;;  %v138_v38 = vmul.u32 3, %v137_v37 }
  0x25   :  { %v139_v40 = vsub.s32 %v112_v19, %v138_v38 }
  0x27   :  { %vm142_vm3 = vcmp.ne.s32.totalorder %v139_v40, 0  ;;  %vm143_vm4 = vcmp.lt.s32.totalorder %v139_v40, 0  ;;  %v145_v42 = vadd.s32 3, %v139_v40 }
  0x28   :  { %vm144_vm5 = vmand %vm143_vm4, %vm142_vm3 }
  0x29   :  { %359 = vset.pattern.permute.xlu2 %v465_v12  ;;  %360 = vset.pattern.permute.xlu1 %v465_v12  ;;  %v541_v45 = vsel %vm144_vm5, %v145_v42, %v139_v40 }
  0x2a   :  { %208 = vperm.xlu2 %359, %v165_v5   ;;  %212 = vperm.xlu1 %360, %v166_v7   ;;  %vm148_vm6 = vcmp.eq.s32.totalorder %v541_v45, 1  ;;  %vm147_vm7 = vcmp.eq.s32.totalorder %v541_v45, 0 }
  0x2b   :  { %367 = vset.pattern.permute.xlu0 %v466_v13 }
  0x2c   :  { %246 = vperm.xlu0 %367, %v165_v5  }
  0x32   :  { %361 = vset.pattern.permute.xlu2 %v464_v11  ;;  %363 = vset.pattern.permute.xlu1 %v467_v14 }
  0x33   :  { %218 = vperm.xlu2 %361, %v165_v5   ;;  %228 = vperm.xlu1 %363, %v165_v5  }
  0x3b   :  { %364 = vset.pattern.permute.xlu2 %v467_v14  ;;  %365 = vset.pattern.permute.xlu1 %v468_v15 }
  0x3c   :  { %232 = vperm.xlu2 %364, %v166_v7   ;;  %236 = vperm.xlu1 %365, %v165_v5  }
  0x44   :  { %366 = vset.pattern.permute.xlu2 %v468_v15  ;;  %368 = vset.pattern.permute.xlu1 %v466_v13 }
  0x45   :  { %240 = vperm.xlu2 %366, %v166_v7   ;;  %250 = vperm.xlu1 %368, %v166_v7  }
  0x4d   :  { %369 = vset.pattern.permute.xlu2 %v464_v11  ;;  %370 = vset.pattern.permute.xlu1 %v464_v11 }
  0x4e   :  { %257 = vperm.xlu2 %369, %v524_v16   ;;  %262 = vperm.xlu1 %370, %v529_v17  }
  0x56   :  { %371 = vset.pattern.permute.xlu2 %v466_v13  ;;  %372 = vset.pattern.permute.xlu1 %v462_v9 }
  0x57   :  { %266 = vperm.xlu2 %371, %v524_v16  }
  0x5f   :  { %373 = vset.pattern.permute.xlu2 %v462_v9 }
  0x69   :  { %v172_v39 = vpop.permute.xlu2 %171 }
  0x72   :  { %v185_v41 = vpop.permute.xlu2 %184 }
  0x7b   :  { %v195_v51 = vpop.permute.xlu2 %194 }
  0x81   :  { %v181_v43 = vpop.permute.xlu1 %180 }
  0x82   :  { %v187_v47 = vsel %vm148_vm6, %v172_v39, %v181_v43  ;;  %v177_v49 = vpop.permute.xlu0 %176 }
  0x83   :  { %v188_v50 = vsel %vm148_vm6, %v177_v49, %v185_v41 }
  0x84   :  { %v198_v54 = vsel %vm147_vm7, %v195_v51, %v188_v50  ;;  %v209_v58 = vpop.permute.xlu2 %208 }
  0x8a   :  { %v191_v52 = vpop.permute.xlu1 %190 }
  0x8b   :  { %v197_v53 = vsel %vm147_vm7, %v191_v52, %v187_v47 }
  0x8c   :  { %v201_v0 = vpop.permute.xlu0 %200 }
  0x8d   :  { %v219_v60 = vpop.permute.xlu2 %218  ;;  %v215_v15 = vsel %vm148_vm6, %v201_v0, %v209_v58 }
  0x8e   :  { %v225_v23 = vsel %vm147_vm7, %v219_v60, %v215_v15 }
  0x92   :  { %v90_v46 = vpop.f32.mrf.mxu0 }
  0x93   :  { %v91_v48 = vadd.f32 %v375_v44, %v90_v46  ;;  %v205_v57 = vpop.permute.xlu1 %204 }
  0x95   :  { %103 = vrot.lane.b32.xlu2 %v91_v48, %s469_s13  ;;  %99 = vrot.lane.b32.xlu1 %v91_v48, %s470_s14  ;;  %v223_v3 = vpop.permute.xlu0 %222 }
  0x96   :  { %95 = vrot.lane.b32.xlu0 %v91_v48, %s471_s2  ;;  %v233_v62 = vpop.permute.xlu2 %232 }
  0x9a   :  { %v92_v55 = vpop.f32.mrf.mxu0 }
  0x9b   :  { %v93_v56 = vadd.f32 %v375_v44, %v92_v55 }
  0x9c   :  { %v213_v59 = vpop.permute.xlu1 %212 }
  0x9d   :  { %105 = vrot.lane.b32.xlu2 %v93_v56, %s469_s13  ;;  %101 = vrot.lane.b32.xlu1 %v93_v56, %s470_s14 }
  0x9e   :  { %107 = vrot.lane.b32.xlu0 %v91_v48, %s472_s15  ;;  %v247_v6 = vpop.permute.xlu0 %246 }
  0x9f   :  { %v241_v1 = vpop.permute.xlu2 %240 }
  0xa0   :  { %v244_v31 = vsel %vm148_vm6, %v233_v62, %v241_v1 }
  0xa5   :  { %109 = vrot.lane.b32.xlu1 %v93_v56, %s472_s15  ;;  %280 = vperm.xlu2 %373, %v529_v17   ;;  %v229_v61 = vpop.permute.xlu1 %228 }
  0xa6   :  { %97 = vrot.lane.b32.xlu0 %v93_v56, %s471_s2 }
  0xa8   :  { %v258_v4 = vpop.permute.xlu2 %257 }
  0xad   :  { %276 = vperm.xlu1 %372, %v524_v16   ;;  %v216_v16 = vsel %vm148_vm6, %v205_v57, %v213_v59 }
  0xae   :  { %270 = vperm.xlu0 %367, %v529_v17   ;;  %v237_v63 = vpop.permute.xlu1 %236  ;;  %v226_v24 = vsel %vm147_vm7, %v223_v3, %v216_v16 }
  0xaf   :  { %v243_v19 = vsel %vm148_vm6, %v229_v61, %v237_v63 }
  0xb0   :  { %v253_v32 = vsel %vm147_vm7, %v247_v6, %v243_v19 }
  0xb1   :  { %v267_v7 = vpop.permute.xlu2 %266 }
  0xb2   :  { %v273_v43 = vsel %vm148_vm6, %v258_v4, %v267_v7 }
  0xb6   :  { %374 = vset.pattern.permute.xlu0 %v462_v9 }
  0xb7   :  { %v251_v2 = vpop.permute.xlu1 %250 }
  0xb8   :  { %v254_v42 = vsel %vm147_vm7, %v251_v2, %v244_v31 }
  0xc0   :  { %v263_v5 = vpop.permute.xlu1 %262 }
  0xef   :  { %v104_v11 = vpop.permute.xlu2 %103 }
  0xf0   :  { %v161_v20 = vsel %vm148_vm6, %v104_v11, %v91_v48 }
  0xf7   :  { %v106_v21 = vpop.permute.xlu2 %105 }
  0xf8   :  { %v162_v35 = vsel %vm148_vm6, %v106_v21, %v93_v56 }
 0x107   :  { %v100_v8 = vpop.permute.xlu1 %99 }
 0x108   :  { %v96_v10 = vpop.permute.xlu0 %95 }
 0x109   :  { %v151_v13 = vsel %vm148_vm6, %v96_v10, %v100_v8  ;;  %v157_v14 = vsel %vm148_vm6, %v91_v48, %v96_v10 }
 0x10a   :  { %v155_v17 = vsel %vm147_vm7, %v91_v48, %v151_v13  ;;  %v159_v18 = vsel %vm147_vm7, %v104_v11, %v157_v14  ;;  %v281_v48 = vpop.permute.xlu2 %280 }
 0x10b   :  { %v285_v27 = vmul.f32 %v197_v53, %v155_v17  ;;  %v287_v28 = vmul.f32 %v225_v23, %v159_v18 }
 0x10d   :  { %v289_v40 = vadd.f32 %v287_v28, %v285_v27 }
 0x10f   :  { %v102_v12 = vpop.permute.xlu1 %101 }
 0x110   :  { %v108_v9 = vpop.permute.xlu0 %107 }
 0x111   :  { %v163_v25 = vsel %vm147_vm7, %v108_v9, %v161_v20 }
 0x112   :  { %v291_v36 = vmul.f32 %v253_v32, %v163_v25 }
 0x114   :  { %v293_v47 = vadd.f32 %v291_v36, %v289_v40 }
 0x117   :  { %v110_v22 = vpop.permute.xlu1 %109 }
 0x118   :  { %v98_v26 = vpop.permute.xlu0 %97  ;;  %v164_v39 = vsel %vm147_vm7, %v110_v22, %v162_v35 }
 0x119   :  { %v152_v29 = vsel %vm148_vm6, %v98_v26, %v102_v12  ;;  %v158_v30 = vsel %vm148_vm6, %v93_v56, %v98_v26  ;;  %v292_v44 = vmul.f32 %v254_v42, %v164_v39 }
 0x11a   :  { %v156_v33 = vsel %vm147_vm7, %v93_v56, %v152_v29  ;;  %v160_v34 = vsel %vm147_vm7, %v106_v21, %v158_v30 }
 0x11b   :  { %v286_v37 = vmul.f32 %v198_v54, %v156_v33  ;;  %v288_v38 = vmul.f32 %v226_v24, %v160_v34 }
 0x11d   :  { %v290_v41 = vadd.f32 %v288_v38, %v286_v37 }
 0x11f   :  { %v277_v46 = vpop.permute.xlu1 %276  ;;  %v294_v53 = vadd.f32 %v292_v44, %v290_v41 }
 0x120   :  { %v283_v49 = vsel %vm147_vm7, %v277_v46, %v273_v43  ;;  %v271_v50 = vpop.permute.xlu0 %270 }
 0x121   :  { %v295_v51 = vadd.f32 %v293_v47, %v283_v49  ;;  %v274_v52 = vsel %vm148_vm6, %v263_v5, %v271_v50 }
 0x122   :  { %v284_v54 = vsel %vm147_vm7, %v281_v48, %v274_v52 }
 0x123   :  { %v296_v55 = vadd.f32 %v294_v53, %v284_v54  ;;  %298 = vst.msk [vmem:[#allocation7] sm:$0xff] %vm297_vm8, %v295_v51 }
 0x125   :  { %299 = vst.msk [vmem:[#allocation7 + $0x8] sm:$0xff] %vm297_vm8, %v296_v55 }
 0x126   :  { %312 = dma.vmem_to_hbm [thread:$0]  %s305_s17, 256, %s307_s20, [#allocation4], %s458_s30, %s458_s30, %s459_s6  }
 0x127   :  { %452 = dma.done.wait [#allocation4], 256  }
 0x128   :  { %453 = vsyncadd [#allocation4], 4294967040 }
 0x129   :  { %317 = vsyncpa [#allocation3], 1 }
 0x12a   :  { %318 = vsyncpa [#allocation6], 1 }
 0x12b   :  { %319 = vsyncpa [#allocation4], 1 }

</bundles_post_ra>
